<compile_context>
chip_gen: v6e
topology: v6e:2x2x1
jax: 0.10.0
libtpu: 0.0.40
codegen_flags: <defaults>
</compile_context>

<pallas_src>
import jax
import jax.numpy as jnp
from jax import lax
from jax.experimental import pallas as pl
from jax.experimental.pallas import tpu as pltpu


def _make_dense_block_kernel(num_layers, c_in, growth, length):
    """Builds the fused DenseBlock kernel body for a fixed static config."""
    lp2 = length + 2                      # padded length (1 halo row each side)

    def kernel(*refs):
        x_ref = refs[0]                   # (1, L, c_in)        input tile
        w_refs = refs[1:1 + num_layers]   # each (3, cin_i, growth)
        b_ref = refs[1 + num_layers]      # (num_layers, growth)
        o_ref = refs[2 + num_layers]      # (1, L, c_final)     output tile
        feat = refs[3 + num_layers]       # VMEM scratch (L+2, c_final)

        # Zero the scratch once per grid step: the two halo rows and the
        # not-yet-written channels must read back as exact zeros (they act as
        # the conv zero-padding for every layer).
        feat[...] = jnp.zeros_like(feat)
        # Real input occupies padded rows 1..L of the first c_in channels.
        feat[1:length + 1, 0:c_in] = x_ref[0].astype(feat.dtype)

        for i in range(num_layers):       # static unroll (num_layers is small)
            cin = c_in + i * growth
            w = w_refs[i][...]            # (3, cin, growth), tap-major
            xin = feat[:, 0:cin]          # (L+2, cin), channels-last, incl. halo

            # kernel_size = 3 -> three MXU matmuls over the full padded length.
            z0 = jnp.dot(xin, w[0], preferred_element_type=jnp.float32)
            z1 = jnp.dot(xin, w[1], preferred_element_type=jnp.float32)
            z2 = jnp.dot(xin, w[2], preferred_element_type=jnp.float32)

            # y[l] = z0[l] + z1[l+1] + z2[l+2] : only the narrow (L, growth)
            # tap results are shifted, never the wide input operand.
            acc = z0[0:length] + z1[1:length + 1] + z2[2:length + 2]
            y = jnp.maximum(acc + b_ref[i:i + 1, :], 0.0)

            # Write this layer's channels into its slice of the feature slab;
            # its halo rows stay zero from the initial scratch clear.
            feat[1:length + 1, cin:cin + growth] = y.astype(feat.dtype)

        # Single lane-dense store of the full concatenated feature slab.
        o_ref[0] = feat[1:length + 1, :].astype(o_ref.dtype)

    return kernel


def dense_block_pallas(x_ncl, params):
    """Fused DenseBlock forward.

    x_ncl: (N, C_in, L) like the PyTorch module.
    params: list of (weight (G, C_in + i*G, 3), bias (G,)) per layer.
    Returns (N, C_in + num_layers*G, L).
    """
    n, c_in, length = x_ncl.shape
    num_layers = len(params)
    growth = params[0][0].shape[0]
    c_final = c_in + num_layers * growth
    lp2 = length + 2

    # One transpose at block entry (channels -> lanes) and one at exit.
    x_nlc = jnp.transpose(x_ncl, (0, 2, 1))                    # (N, L, C_in)

    # Weights (G, cin, 3) -> tap-major, channels-last (3, cin, G); biases stacked.
    ws = [jnp.transpose(w, (2, 1, 0)) for w, _ in params]
    bs = jnp.stack([b for _, b in params], axis=0)              # (num_layers, G)

    kernel = _make_dense_block_kernel(num_layers, c_in, growth, length)

    in_specs = [pl.BlockSpec((1, length, c_in), lambda i: (i, 0, 0))]
    in_specs += [
        pl.BlockSpec((3, c_in + j * growth, growth), lambda i: (0, 0, 0))
        for j in range(num_layers)
    ]
    in_specs += [pl.BlockSpec((num_layers, growth), lambda i: (0, 0))]
    out_specs = pl.BlockSpec((1, length, c_final), lambda i: (i, 0, 0))

    # VMEM budget: double-buffered in/out tiles + weights + the feature scratch.
    itemsize = jnp.dtype(x_ncl.dtype).itemsize
    est = (2 * length * c_in * itemsize
           + 2 * length * c_final * itemsize
           + sum(3 * (c_in + j * growth) * growth for j in range(num_layers)) * 4
           + num_layers * growth * 4
           + lp2 * c_final * 4)
    vmem_limit = int(min(64 * 2 ** 20, max(32 * 2 ** 20, 2 * est)))

    out_nlc = pl.pallas_call(
        kernel,
        out_shape=jax.ShapeDtypeStruct((n, length, c_final), x_ncl.dtype),
        grid_spec=pltpu.PrefetchScalarGridSpec(
            num_scalar_prefetch=0,
            grid=(n,),                                  # pipelined over batch
            in_specs=in_specs,
            out_specs=out_specs,
            scratch_shapes=[pltpu.VMEM((lp2, c_final), jnp.float32)],
        ),
        compiler_params=pltpu.CompilerParams(
            dimension_semantics=("parallel",),
            vmem_limit_bytes=vmem_limit,
        ),
    )(x_nlc, *ws, bs)

    return jnp.transpose(out_nlc, (0, 2, 1))                   # (N, C_final, L)


def init_dense_block_params(key, in_channels, growth_rate, num_layers):
    """Deterministic params: list of (weight (G, Cin_i, 3), bias (G,))."""
    params = []
    for i in range(num_layers):
        cin = in_channels + i * growth_rate
        key, kw, kb = jax.random.split(key, 3)
        # PyTorch Conv1d default init: U(-s, s), s = 1/sqrt(cin * ksize)
        s = 1.0 / jnp.sqrt(jnp.float32(cin * 3))
        w = jax.random.uniform(kw, (growth_rate, cin, 3), jnp.float32, -s, s)
        b = jax.random.uniform(kb, (growth_rate,), jnp.float32, -s, s)
        params.append((w, b))
    return params


def _reference_forward(x, params):
    """Pure-JAX reference (lax conv) mirroring the PyTorch module."""
    features = [x]
    for w, b in params:
        cat = jnp.concatenate(features, axis=1)
        out = lax.conv_general_dilated(
            cat, w, window_strides=(1,), padding=((1, 1),),
            dimension_numbers=("NCH", "OIH", "NCH"))
        out = jnp.maximum(out + b[None, :, None], 0.0)
        features.append(out)
    return jnp.concatenate(features, axis=1)


if __name__ == "__main__":
    N, C_IN, L = 2, 4, 16
    GROWTH, NUM_LAYERS = 4, 3

    key = jax.random.PRNGKey(0)
    key, kx = jax.random.split(key)
    x = jax.random.normal(kx, (N, C_IN, L), jnp.float32)

    params = init_dense_block_params(key, C_IN, GROWTH, NUM_LAYERS)

    y = jax.block_until_ready(dense_block_pallas(x, params))
    assert y.shape == (N, C_IN + NUM_LAYERS * GROWTH, L), y.shape

    y_ref = jax.block_until_ready(_reference_forward(x, params))
    assert jnp.allclose(y, y_ref, atol=1e-5, rtol=1e-5), "mismatch vs reference"

    print("KERNEL_OK")
</pallas_src>

<mosaic_0001>
module attributes {stable_mosaic.version = 11 : i64} {
  func.func @kernel(%arg0: i32, %arg1: memref<1x16x4xf32, #tpu.memory_space<vmem>>, %arg2: memref<3x4x4xf32, #tpu.memory_space<vmem>>, %arg3: memref<3x8x4xf32, #tpu.memory_space<vmem>>, %arg4: memref<3x12x4xf32, #tpu.memory_space<vmem>>, %arg5: memref<3x4xf32, #tpu.memory_space<vmem>>, %arg6: memref<1x16x16xf32, #tpu.memory_space<vmem>>, %arg7: memref<18x16xf32, #tpu.memory_space<vmem>>) attributes {dimension_semantics = [#tpu.dimension_semantics<parallel>], iteration_bounds = array<i64: 2>, scalar_prefetch = 0 : i64, scratch_operands = 1 : i64, tpu.core_type = #tpu.core_type<tc>, window_params = [{transform_indices = @transform_0, window_bounds = array<i64: 1, 16, 4>}, {pipeline_mode = #tpu.pipeline_mode<synchronous>, transform_indices = @transform_1, window_bounds = array<i64: 3, 4, 4>}, {pipeline_mode = #tpu.pipeline_mode<synchronous>, transform_indices = @transform_2, window_bounds = array<i64: 3, 8, 4>}, {pipeline_mode = #tpu.pipeline_mode<synchronous>, transform_indices = @transform_3, window_bounds = array<i64: 3, 12, 4>}, {pipeline_mode = #tpu.pipeline_mode<synchronous>, transform_indices = @transform_4, window_bounds = array<i64: 3, 4>}, {transform_indices = @transform_5, window_bounds = array<i64: 1, 16, 16>}]} {
    %cst = arith.constant 0.000000e+00 : f32
    %0 = vector.broadcast %cst : f32 to vector<18x16xf32>
    %c0 = arith.constant 0 : index
    %c0_0 = arith.constant 0 : index
    %1 = vector.load %arg7[%c0, %c0_0] : memref<18x16xf32, #tpu.memory_space<vmem>>, vector<18x16xf32>
    tpu.vector_store %arg7[%c0, %c0_0], %0 {strides = array<i32>} : memref<18x16xf32, #tpu.memory_space<vmem>>, vector<18x16xf32>,
    %c0_1 = arith.constant 0 : index
    %c0_2 = arith.constant 0 : index
    %c0_3 = arith.constant 0 : index
    %2 = vector.load %arg1[%c0_1, %c0_2, %c0_3] : memref<1x16x4xf32, #tpu.memory_space<vmem>>, vector<1x16x4xf32>
    %3 = vector.shape_cast %2 : vector<1x16x4xf32> to vector<16x4xf32>
    %c1 = arith.constant 1 : index
    %c0_4 = arith.constant 0 : index
    %4 = vector.load %arg7[%c1, %c0_4] : memref<18x16xf32, #tpu.memory_space<vmem>>, vector<16x4xf32>
    tpu.vector_store %arg7[%c1, %c0_4], %3 {strides = array<i32>} : memref<18x16xf32, #tpu.memory_space<vmem>>, vector<16x4xf32>,
    %c0_5 = arith.constant 0 : index
    %c0_6 = arith.constant 0 : index
    %c0_7 = arith.constant 0 : index
    %5 = vector.load %arg2[%c0_5, %c0_6, %c0_7] : memref<3x4x4xf32, #tpu.memory_space<vmem>>, vector<3x4x4xf32>
    %c0_8 = arith.constant 0 : index
    %c0_9 = arith.constant 0 : index
    %6 = vector.load %arg7[%c0_8, %c0_9] : memref<18x16xf32, #tpu.memory_space<vmem>>, vector<18x4xf32>
    %7 = vector.extract_strided_slice %5 {offsets = [0, 0, 0], sizes = [1, 4, 4], strides = [1, 1, 1]} : vector<3x4x4xf32> to vector<1x4x4xf32>
    %8 = vector.shape_cast %7 : vector<1x4x4xf32> to vector<4x4xf32>
    %cst_10 = arith.constant dense<0.000000e+00> : vector<18x4xf32>
    %9 = tpu.matmul %6, %8, %cst_10 {dimension_numbers = #tpu.dot_dimension_numbers<[1], [0], [0], [1], [0, 0, 1, 1], [], []>} : vector<18x4xf32>, vector<4x4xf32>, vector<18x4xf32> -> vector<18x4xf32>
    %10 = vector.extract_strided_slice %5 {offsets = [1, 0, 0], sizes = [1, 4, 4], strides = [1, 1, 1]} : vector<3x4x4xf32> to vector<1x4x4xf32>
    %11 = vector.shape_cast %10 : vector<1x4x4xf32> to vector<4x4xf32>
    %cst_11 = arith.constant dense<0.000000e+00> : vector<18x4xf32>
    %12 = tpu.matmul %6, %11, %cst_11 {dimension_numbers = #tpu.dot_dimension_numbers<[1], [0], [0], [1], [0, 0, 1, 1], [], []>} : vector<18x4xf32>, vector<4x4xf32>, vector<18x4xf32> -> vector<18x4xf32>
    %13 = vector.extract_strided_slice %5 {offsets = [2, 0, 0], sizes = [1, 4, 4], strides = [1, 1, 1]} : vector<3x4x4xf32> to vector<1x4x4xf32>
    %14 = vector.shape_cast %13 : vector<1x4x4xf32> to vector<4x4xf32>
    %cst_12 = arith.constant dense<0.000000e+00> : vector<18x4xf32>
    %15 = tpu.matmul %6, %14, %cst_12 {dimension_numbers = #tpu.dot_dimension_numbers<[1], [0], [0], [1], [0, 0, 1, 1], [], []>} : vector<18x4xf32>, vector<4x4xf32>, vector<18x4xf32> -> vector<18x4xf32>
    %16 = vector.extract_strided_slice %9 {offsets = [0, 0], sizes = [16, 4], strides = [1, 1]} : vector<18x4xf32> to vector<16x4xf32>
    %17 = vector.extract_strided_slice %12 {offsets = [1, 0], sizes = [16, 4], strides = [1, 1]} : vector<18x4xf32> to vector<16x4xf32>
    %18 = arith.addf %16, %17 : vector<16x4xf32>
    %19 = vector.extract_strided_slice %15 {offsets = [2, 0], sizes = [16, 4], strides = [1, 1]} : vector<18x4xf32> to vector<16x4xf32>
    %20 = arith.addf %18, %19 : vector<16x4xf32>
    %c0_13 = arith.constant 0 : index
    %c0_14 = arith.constant 0 : index
    %21 = vector.load %arg5[%c0_13, %c0_14] : memref<3x4xf32, #tpu.memory_space<vmem>>, vector<1x4xf32>
    %22 = vector.broadcast %21 : vector<1x4xf32> to vector<16x4xf32>
    %23 = arith.addf %20, %22 : vector<16x4xf32>
    %cst_15 = arith.constant 0.000000e+00 : f32
    %24 = vector.broadcast %cst_15 : f32 to vector<16x4xf32>
    %25 = arith.maximumf %23, %24 : vector<16x4xf32>
    %c1_16 = arith.constant 1 : index
    %c4 = arith.constant 4 : index
    %26 = vector.load %arg7[%c1_16, %c4] : memref<18x16xf32, #tpu.memory_space<vmem>>, vector<16x4xf32>
    tpu.vector_store %arg7[%c1_16, %c4], %25 {strides = array<i32>} : memref<18x16xf32, #tpu.memory_space<vmem>>, vector<16x4xf32>,
    %c0_17 = arith.constant 0 : index
    %c0_18 = arith.constant 0 : index
    %c0_19 = arith.constant 0 : index
    %27 = vector.load %arg3[%c0_17, %c0_18, %c0_19] : memref<3x8x4xf32, #tpu.memory_space<vmem>>, vector<3x8x4xf32>
    %c0_20 = arith.constant 0 : index
    %c0_21 = arith.constant 0 : index
    %28 = vector.load %arg7[%c0_20, %c0_21] : memref<18x16xf32, #tpu.memory_space<vmem>>, vector<18x8xf32>
    %29 = vector.extract_strided_slice %27 {offsets = [0, 0, 0], sizes = [1, 8, 4], strides = [1, 1, 1]} : vector<3x8x4xf32> to vector<1x8x4xf32>
    %30 = vector.shape_cast %29 : vector<1x8x4xf32> to vector<8x4xf32>
    %cst_22 = arith.constant dense<0.000000e+00> : vector<18x4xf32>
    %31 = tpu.matmul %28, %30, %cst_22 {dimension_numbers = #tpu.dot_dimension_numbers<[1], [0], [0], [1], [0, 0, 1, 1], [], []>} : vector<18x8xf32>, vector<8x4xf32>, vector<18x4xf32> -> vector<18x4xf32>
    %32 = vector.extract_strided_slice %27 {offsets = [1, 0, 0], sizes = [1, 8, 4], strides = [1, 1, 1]} : vector<3x8x4xf32> to vector<1x8x4xf32>
    %33 = vector.shape_cast %32 : vector<1x8x4xf32> to vector<8x4xf32>
    %cst_23 = arith.constant dense<0.000000e+00> : vector<18x4xf32>
    %34 = tpu.matmul %28, %33, %cst_23 {dimension_numbers = #tpu.dot_dimension_numbers<[1], [0], [0], [1], [0, 0, 1, 1], [], []>} : vector<18x8xf32>, vector<8x4xf32>, vector<18x4xf32> -> vector<18x4xf32>
    %35 = vector.extract_strided_slice %27 {offsets = [2, 0, 0], sizes = [1, 8, 4], strides = [1, 1, 1]} : vector<3x8x4xf32> to vector<1x8x4xf32>
    %36 = vector.shape_cast %35 : vector<1x8x4xf32> to vector<8x4xf32>
    %cst_24 = arith.constant dense<0.000000e+00> : vector<18x4xf32>
    %37 = tpu.matmul %28, %36, %cst_24 {dimension_numbers = #tpu.dot_dimension_numbers<[1], [0], [0], [1], [0, 0, 1, 1], [], []>} : vector<18x8xf32>, vector<8x4xf32>, vector<18x4xf32> -> vector<18x4xf32>
    %38 = vector.extract_strided_slice %31 {offsets = [0, 0], sizes = [16, 4], strides = [1, 1]} : vector<18x4xf32> to vector<16x4xf32>
    %39 = vector.extract_strided_slice %34 {offsets = [1, 0], sizes = [16, 4], strides = [1, 1]} : vector<18x4xf32> to vector<16x4xf32>
    %40 = arith.addf %38, %39 : vector<16x4xf32>
    %41 = vector.extract_strided_slice %37 {offsets = [2, 0], sizes = [16, 4], strides = [1, 1]} : vector<18x4xf32> to vector<16x4xf32>
    %42 = arith.addf %40, %41 : vector<16x4xf32>
    %c1_25 = arith.constant 1 : index
    %c0_26 = arith.constant 0 : index
    %43 = vector.load %arg5[%c1_25, %c0_26] : memref<3x4xf32, #tpu.memory_space<vmem>>, vector<1x4xf32>
    %44 = vector.broadcast %43 : vector<1x4xf32> to vector<16x4xf32>
    %45 = arith.addf %42, %44 : vector<16x4xf32>
    %cst_27 = arith.constant 0.000000e+00 : f32
    %46 = vector.broadcast %cst_27 : f32 to vector<16x4xf32>
    %47 = arith.maximumf %45, %46 : vector<16x4xf32>
    %c1_28 = arith.constant 1 : index
    %c8 = arith.constant 8 : index
    %48 = vector.load %arg7[%c1_28, %c8] : memref<18x16xf32, #tpu.memory_space<vmem>>, vector<16x4xf32>
    tpu.vector_store %arg7[%c1_28, %c8], %47 {strides = array<i32>} : memref<18x16xf32, #tpu.memory_space<vmem>>, vector<16x4xf32>,
    %c0_29 = arith.constant 0 : index
    %c0_30 = arith.constant 0 : index
    %c0_31 = arith.constant 0 : index
    %49 = vector.load %arg4[%c0_29, %c0_30, %c0_31] : memref<3x12x4xf32, #tpu.memory_space<vmem>>, vector<3x12x4xf32>
    %c0_32 = arith.constant 0 : index
    %c0_33 = arith.constant 0 : index
    %50 = vector.load %arg7[%c0_32, %c0_33] : memref<18x16xf32, #tpu.memory_space<vmem>>, vector<18x12xf32>
    %51 = vector.extract_strided_slice %49 {offsets = [0, 0, 0], sizes = [1, 12, 4], strides = [1, 1, 1]} : vector<3x12x4xf32> to vector<1x12x4xf32>
    %52 = vector.shape_cast %51 : vector<1x12x4xf32> to vector<12x4xf32>
    %cst_34 = arith.constant dense<0.000000e+00> : vector<18x4xf32>
    %53 = tpu.matmul %50, %52, %cst_34 {dimension_numbers = #tpu.dot_dimension_numbers<[1], [0], [0], [1], [0, 0, 1, 1], [], []>} : vector<18x12xf32>, vector<12x4xf32>, vector<18x4xf32> -> vector<18x4xf32>
    %54 = vector.extract_strided_slice %49 {offsets = [1, 0, 0], sizes = [1, 12, 4], strides = [1, 1, 1]} : vector<3x12x4xf32> to vector<1x12x4xf32>
    %55 = vector.shape_cast %54 : vector<1x12x4xf32> to vector<12x4xf32>
    %cst_35 = arith.constant dense<0.000000e+00> : vector<18x4xf32>
    %56 = tpu.matmul %50, %55, %cst_35 {dimension_numbers = #tpu.dot_dimension_numbers<[1], [0], [0], [1], [0, 0, 1, 1], [], []>} : vector<18x12xf32>, vector<12x4xf32>, vector<18x4xf32> -> vector<18x4xf32>
    %57 = vector.extract_strided_slice %49 {offsets = [2, 0, 0], sizes = [1, 12, 4], strides = [1, 1, 1]} : vector<3x12x4xf32> to vector<1x12x4xf32>
    %58 = vector.shape_cast %57 : vector<1x12x4xf32> to vector<12x4xf32>
    %cst_36 = arith.constant dense<0.000000e+00> : vector<18x4xf32>
    %59 = tpu.matmul %50, %58, %cst_36 {dimension_numbers = #tpu.dot_dimension_numbers<[1], [0], [0], [1], [0, 0, 1, 1], [], []>} : vector<18x12xf32>, vector<12x4xf32>, vector<18x4xf32> -> vector<18x4xf32>
    %60 = vector.extract_strided_slice %53 {offsets = [0, 0], sizes = [16, 4], strides = [1, 1]} : vector<18x4xf32> to vector<16x4xf32>
    %61 = vector.extract_strided_slice %56 {offsets = [1, 0], sizes = [16, 4], strides = [1, 1]} : vector<18x4xf32> to vector<16x4xf32>
    %62 = arith.addf %60, %61 : vector<16x4xf32>
    %63 = vector.extract_strided_slice %59 {offsets = [2, 0], sizes = [16, 4], strides = [1, 1]} : vector<18x4xf32> to vector<16x4xf32>
    %64 = arith.addf %62, %63 : vector<16x4xf32>
    %c2 = arith.constant 2 : index
    %c0_37 = arith.constant 0 : index
    %65 = vector.load %arg5[%c2, %c0_37] : memref<3x4xf32, #tpu.memory_space<vmem>>, vector<1x4xf32>
    %66 = vector.broadcast %65 : vector<1x4xf32> to vector<16x4xf32>
    %67 = arith.addf %64, %66 : vector<16x4xf32>
    %cst_38 = arith.constant 0.000000e+00 : f32
    %68 = vector.broadcast %cst_38 : f32 to vector<16x4xf32>
    %69 = arith.maximumf %67, %68 : vector<16x4xf32>
    %c1_39 = arith.constant 1 : index
    %c12 = arith.constant 12 : index
    %70 = vector.load %arg7[%c1_39, %c12] : memref<18x16xf32, #tpu.memory_space<vmem>>, vector<16x4xf32>
    tpu.vector_store %arg7[%c1_39, %c12], %69 {strides = array<i32>} : memref<18x16xf32, #tpu.memory_space<vmem>>, vector<16x4xf32>,
    %c1_40 = arith.constant 1 : index
    %c0_41 = arith.constant 0 : index
    %71 = vector.load %arg7[%c1_40, %c0_41] : memref<18x16xf32, #tpu.memory_space<vmem>>, vector<16x16xf32>
    %c0_42 = arith.constant 0 : index
    %c0_43 = arith.constant 0 : index
    %c0_44 = arith.constant 0 : index
    %72 = vector.load %arg6[%c0_42, %c0_43, %c0_44] : memref<1x16x16xf32, #tpu.memory_space<vmem>>, vector<1x16x16xf32>
    %73 = vector.shape_cast %72 : vector<1x16x16xf32> to vector<16x16xf32>
    %74 = vector.shape_cast %71 : vector<16x16xf32> to vector<1x16x16xf32>
    tpu.vector_store %arg6[%c0_42, %c0_43, %c0_44], %74 {strides = array<i32>} : memref<1x16x16xf32, #tpu.memory_space<vmem>>, vector<1x16x16xf32>,
    return
  }
  func.func @transform_0(%arg0: i32) -> (i32, i32, i32) {
    %c0_i32 = arith.constant 0 : i32
    %c0_i32_0 = arith.constant 0 : i32
    %c0_i32_1 = arith.constant 0 : i32
    return %arg0, %c0_i32, %c0_i32_0 : i32, i32, i32
  }
  func.func @transform_1(%arg0: i32) -> (i32, i32, i32) {
    %c0_i32 = arith.constant 0 : i32
    %c0_i32_0 = arith.constant 0 : i32
    %c0_i32_1 = arith.constant 0 : i32
    %c0_i32_2 = arith.constant 0 : i32
    return %c0_i32, %c0_i32_0, %c0_i32_1 : i32, i32, i32
  }
  func.func @transform_2(%arg0: i32) -> (i32, i32, i32) {
    %c0_i32 = arith.constant 0 : i32
    %c0_i32_0 = arith.constant 0 : i32
    %c0_i32_1 = arith.constant 0 : i32
    %c0_i32_2 = arith.constant 0 : i32
    return %c0_i32, %c0_i32_0, %c0_i32_1 : i32, i32, i32
  }
  func.func @transform_3(%arg0: i32) -> (i32, i32, i32) {
    %c0_i32 = arith.constant 0 : i32
    %c0_i32_0 = arith.constant 0 : i32
    %c0_i32_1 = arith.constant 0 : i32
    %c0_i32_2 = arith.constant 0 : i32
    return %c0_i32, %c0_i32_0, %c0_i32_1 : i32, i32, i32
  }
  func.func @transform_4(%arg0: i32) -> (i32, i32) {
    %c0_i32 = arith.constant 0 : i32
    %c0_i32_0 = arith.constant 0 : i32
    %c0_i32_1 = arith.constant 0 : i32
    return %c0_i32, %c0_i32_0 : i32, i32
  }
  func.func @transform_5(%arg0: i32) -> (i32, i32, i32) {
    %c0_i32 = arith.constant 0 : i32
    %c0_i32_0 = arith.constant 0 : i32
    %c0_i32_1 = arith.constant 0 : i32
    return %arg0, %c0_i32, %c0_i32_0 : i32, i32, i32
  }
}

</mosaic_0001>

<bundles_post_ra>
// kernel: tpu_custom_call.1
= control target key start
LH: loop header
LB: loop body
LE: loop exit
PB: predicated region body
PF: predicated region fallthrough
CT: control target
= control target key end

     0   :  { %10 = vsyncpa [#allocation4], 0  ;;  %s1845_s0 = inlined_call_operand.vmem [shape: f32[2,16,4], index: 0, kind: input, shape index: {}]   ;;  %s1846_s1 = inlined_call_operand.vmem [shape: f32[3,4,4], index: 1, kind: input, shape index: {}]   ;;  %s1847_s2 = inlined_call_operand.vmem [shape: f32[3,8,4], index: 2, kind: input, shape index: {}]   ;;  %s1848_s3 = inlined_call_operand.vmem [shape: f32[3,12,4], index: 3, kind: input, shape index: {}]   ;;  %s1849_s4 = inlined_call_operand.vmem [shape: f32[3,4], index: 4, kind: input, shape index: {}]   ;;  %s1850_s5 = inlined_call_operand.hbm [shape: f32[2,16,16], index: 5, kind: output, shape index: {}]  }
   0x1   :  { %12 = vsyncpa [#allocation4 + $0x1], 0  ;;  %s1573_s18 = smov 0   ;;  %s1575_s19 = smov 0  }
   0x2   :  { %s1577_s20 = smov 0   ;;  %s1579_s21 = smov 0  }
   0x3 LB: > { %s1594_s22 = sadd.s32 4294967295, %s1534_s21   ;;  %s1233_s23 = sadd.s32 4294967294, %s1534_s21   ;;  %s1534_s21 = sphi %s1579_s21, %s1856_s21   ;;  %s1530_s20 = sphi %s1577_s20, %s1855_s20   ;;  %s1526_s19 = sphi %s1575_s19, %s1854_s19   ;;  %s1522_s18 = sphi %s1573_s18, %s1853_s18  }
   0x4   : > { %s1598_s24 = sadd.s32 1, %s1534_s21   ;;  %s135_s25 = sadd.s32 1, %s1530_s20 }
   0x5   : > { %s132_s26 = ssub.s32 %s1534_s21, %s1598_s24  ;;  %p145_p0 = scmp.ne.s32.totalorder %s1530_s20, %s1526_s19 }
   0x6   : > { %p133_p1 = scmp.eq.s32.totalorder %s132_s26, 0  ;;  %p146_p2 = scmp.eq.s32.totalorder %s1594_s22, 1 }
   0x7   : > { %p151_p3 = scmp.ne.s32.totalorder %s1526_s19, %s1522_s18  ;;  %p152_p4 = scmp.eq.s32.totalorder %s1233_s23, 1 }
   0x8   : > { %s1609_s27 = scalar_select %p133_p1, %s1530_s20, %s135_s25  }
   0x9   : > { %p1611_p5 = por %p146_p2, %p145_p0  ;;  %p1615_p6 = por %p152_p4, %p151_p3 }
   0xa   : > { %p1236_p7 = scmp.ge.s32.totalorder %s1534_s21, 1  ;;  %p190_p8 = scmp.lt.s32.totalorder %s1534_s21, 3 }
   0xc   : > { %p191_p9 = pnand %p1236_p7, %p190_p8 }
   0xd   : > { %p218_p10 = scmp.lt.s32.totalorder (!%p191_p9), %s1594_s22, 1  ;;  %s1538_s6 = smov (!%p191_p9), 4  }
   0xe   : > { %194 = sbr.rel (%p191_p9) target bundleno = 1072 (0x430), region = 40  ;;  %s1539_s25 = smov (!%p191_p9), 8  }
   0xf   : > { %s1540_s10 = smov (!%p191_p9), 12   ;;  %s1282_s13 = sshll.u32 (!%p191_p9), %s1594_s22, 8 }
  0x10   : > { %s1799_s23 = scalar_lea.hbm (!%p191_p9), %s1850_s5, %s1282_s13  ;;  %s1541_s30 = smov (!%p191_p9), [#allocation3]  }
  0x13   : > { %v233_v0 = vld [vmem:[%s1846_s1] sm:$0xf]  ;;  %vm248_vm0 = vcmask 1043456   ;;  %v1536_v1 = vmov 0.0   ;;  %vm1537_vm1 = vmmov 0   ;;  %vm223_vm2 = vcmask 130048  }
  0x14   : > { %1427 = vmatprep.subr.mxu1 %v1536_v1  ;;  %1327 = vmatprep.mubr.msk.f32.mxu1 %vm1537_vm1, %v1536_v1  ;;  %vm226_vm3 = vcmask 123904   ;;  %s219_s7 = scalar_select %p218_p10, %s1594_s22, 1  ;;  %224 = vst.msk [vmem:[#allocation2] sm:$0xff] %vm223_vm2, %v1536_v1  ;;  %225 = vst.msk [vmem:[#allocation2 + $0x8] sm:$0xff] %vm223_vm2, %v1536_v1  ;;  %vm230_vm4 = vcmask 31744   ;;  %v543_v9 = vld [vmem:[%s1847_s2] sm:$0xff] }
  0x15   : > { %1428 = vmatpush3.msk.msra.mxu1 %vm248_vm0, %v233_v0  ;;  %1322 = vmatprep.subr.mxu0 %v1536_v1  ;;  %227 = vst.msk [vmem:[#allocation2 + $0x10] sm:$0x3] %vm226_vm3, %v1536_v1  ;;  %v234_v4 = vld [vmem:[%s1846_s1 + $0x4] sm:$0xf]  ;;  %v235_v7 = vld [vmem:[%s1846_s1 + $0x8] sm:$0xf] }
  0x16   : > { %1333 = vmatprep.subr.mxu1 %v1536_v1  ;;  %1323 = vmatpush3.msk.msra.mxu0 %vm248_vm0, %v233_v0  ;;  %s1281_s8 = sshll.u32 %s219_s7, 4  ;;  %vm500_vm5 = vcmask 1046528   ;;  %vm513_vm6 = vcmask 1045504   ;;  %v544_v31 = vld [vmem:[%s1847_s2 + $0x8] sm:$0xff]  ;;  %v1252_v37 = vld [vmem:[%s1849_s4] ss:$0 sm:$0xff] }
  0x17   : > { %1324 = vmatprep.mubr.msk.f32.mxu0 %vm1537_vm1, %v1536_v1  ;;  %1344 = vmatprep.subr.mxu0 %v1536_v1  ;;  %s222_s11 = scalar_lea.vmem %s1845_s0, %s1281_s8  ;;  %vm540_vm7 = vcmask 64544   ;;  %vm549_vm8 = vcmask 64512   ;;  %v545_v50 = vld [vmem:[%s1847_s2 + $0x10] sm:$0xff]  ;;  %v843_v54 = vld [vmem:[%s1848_s3 + $0x8] sm:$0xf]  ;;  %vm839_vm9 = vcmask 97344  }
  0x18   : > { %v228_v2 = vld [vmem:[%s222_s11] sm:$0xff]  ;;  %v229_v3 = vld [vmem:[%s222_s11 + $0x8] sm:$0xff]  ;;  %vm851_vm10 = vcmask 97280   ;;  %vm1150_vm11 = vcmask 130144   ;;  %s215_s11 = sand.u32 1, %s1526_s19  }
  0x19   : > { %231 = vst.msk [vmem:[#allocation2 + $0x1] sm:$0xff] %vm230_vm4, %v228_v2  ;;  %232 = vst.msk [vmem:[#allocation2 + $0x9] sm:$0xff] %vm230_vm4, %v229_v3  ;;  %s1237_s12 = sshll.u32 %s215_s11, 4  ;;  %s1804_s26 = scalar_lea.sflag [#allocation4], %s215_s11 }
  0x1a   : > { %s217_s14 = scalar_lea.vmem [#allocation3], %s1237_s12 }
  0x1b   : > { %s1171_s15 = sshll.u32 %s217_s14, 4  ;;  %s1801_s15 = int_to_ptr.vmem [resolvable:$true] %s1171_s15 }
  0x1c   : > { %s1474_s22 = scalar_lea.vmem %s1801_s15, 256 }
  0x1d   : > { %p1475_p11 = scmp.ne.s32.totalorder %s1801_s15, %s1474_s22 }
  0x1f   : > { %p1476_p12 = pnand %p1475_p11, %p1611_p5 }
  0x20   : > { %v237_v5 = vld [vmem:[#allocation2 + $0x8] sm:$0xff]  ;;  %v236_v6 = vld [vmem:[#allocation2] sm:$0xff]  ;;  %v238_v8 = vld [vmem:[#allocation2 + $0x10] sm:$0x3] }
  0x21   : > { %1328 = vmatmul.mubr.msk.f32.vlgmr.msra.gmra.mxu1 %vm230_vm4, %v237_v5  ;;  %1325 = vmatmul.mubr.msk.f32.vlgmr.msra.gmra.mxu0 %vm230_vm4, %v236_v6  ;;  %p1477_p13 = pneg %p1476_p12 }
  0x22   : > { %1334 = vmatpush3.msk.msra.mxu1 %vm248_vm0, %v234_v4  ;;  %1330 = vmatprep.mubr.msk.f32.mxu1 %vm1537_vm1, %v1536_v1 }
  0x23   : > { %1345 = vmatpush3.msk.msra.mxu0 %vm248_vm0, %v235_v7  ;;  %1346 = vmatprep.mubr.msk.f32.mxu0 %vm1537_vm1, %v1536_v1  ;;  %v842_v7 = vld [vmem:[%s1848_s3] sm:$0xff] }
  0x24   : > { %1355 = vmatprep.subr.mxu1 %v1536_v1  ;;  %1366 = vmatprep.subr.mxu0 %v1536_v1 }
  0x25   : > { %1331 = vmatmul.mubr.msk.f32.gmra.mxu1 %vm230_vm4, %v238_v8  ;;  %1347 = vmatmul.mubr.msk.f32.vlgmr.msra.gmra.mxu0 %vm230_vm4, %v236_v6 }
  0x26   : > { %1335 = vmatprep.mubr.msk.f32.mxu1 %vm1537_vm1, %v1536_v1  ;;  %1349 = vmatprep.mubr.msk.f32.mxu0 %vm1537_vm1, %v1536_v1 }
  0x27   : > { %1367 = vmatpush3.msra.mxu0 %v544_v31 }
  0x28   : > { %1388 = vmatprep.subr.mxu0 %v1536_v1 }
  0x29   : > { %1336 = vmatmul.mubr.msk.f32.vlgmr.msra.gmra.mxu1 %vm230_vm4, %v236_v6  ;;  %1350 = vmatmul.mubr.msk.f32.gmra.mxu0 %vm230_vm4, %v237_v5 }
  0x2a   : > { %1338 = vmatprep.mubr.msk.f32.mxu1 %vm1537_vm1, %v1536_v1  ;;  %1352 = vmatprep.mubr.msk.f32.mxu0 %vm1537_vm1, %v1536_v1 }
  0x2b   : > { %1356 = vmatpush3.msra.mxu1 %v543_v9 }
  0x2c   : > { %1377 = vmatprep.subr.mxu1 %v1536_v1 }
  0x2d   : > { %1339 = vmatmul.mubr.msk.f32.gmra.mxu1 %vm230_vm4, %v237_v5  ;;  %1353 = vmatmul.mubr.msk.f32.gmra.mxu0 %vm230_vm4, %v238_v8 }
  0x2e   : > { %1341 = vmatprep.mubr.msk.f32.mxu1 %vm1537_vm1, %v1536_v1  ;;  %1368 = vmatprep.mubr.msk.f32.mxu0 %vm1537_vm1, %v1536_v1 }
  0x31   : > { %1342 = vmatmul.mubr.msk.f32.gmra.mxu1 %vm230_vm4, %v238_v8 }
  0x32   : > { %1357 = vmatprep.mubr.msk.f32.mxu1 %vm1537_vm1, %v1536_v1 }
  0xe1   : > { %v323_v10 = vpop.f32.mrf.mxu1  ;;  %v318_v11 = vpop.f32.mrf.mxu0 }
  0xe3   : > { %v1329_v12 = vpop.f32.mrf.mxu1  ;;  %v1326_v13 = vpop.f32.mrf.mxu0 }
  0xe5   : > { %v328_v14 = vpop.f32.mrf.mxu1  ;;  %v483_v15 = vpop.f32.mrf.mxu0 }
  0xe6   : > { %v514_v24 = vrot.slane %v483_v15, 2  ;;  %v845_v14 = vld [vmem:[%s1848_s3 + $0x18] sm:$0xf]  ;;  %v844_v15 = vld [vmem:[%s1848_s3 + $0x10] sm:$0xff] }
  0xe7   : > { %v1332_v16 = vpop.f32.mrf.mxu1  ;;  %v1348_v17 = vpop.f32.mrf.mxu0 }
  0xe9   : > { %v400_v18 = vpop.f32.mrf.mxu1  ;;  %v488_v19 = vpop.f32.mrf.mxu0 }
  0xea   : > { %v501_v25 = vrot.slane %v400_v18, 1  ;;  %v515_v26 = vrot.slane %v488_v19, 2 }
  0xeb   : > { %v1337_v20 = vpop.f32.mrf.mxu1  ;;  %v1351_v21 = vpop.f32.mrf.mxu0 }
  0xec   : > { %v516_v36 = vsel %vm513_vm6, %v514_v24, %v515_v26  ;;  %v1262_v20 = vld [vmem:[%s1849_s4 + $0x1] ss:$0 sm:$0xff] }
  0xed   : > { %v405_v22 = vpop.f32.mrf.mxu1  ;;  %v493_v23 = vpop.f32.mrf.mxu0 }
  0xee   : > { %v502_v27 = vrot.slane %v405_v22, 1  ;;  %v517_v34 = vrot.slane %v493_v23, 2 }
  0xef   : > { %v1340_v28 = vpop.f32.mrf.mxu1  ;;  %v1354_v29 = vpop.f32.mrf.mxu0 }
  0xf0   : > { %v503_v30 = vsel %vm500_vm5, %v501_v25, %v502_v27  ;;  %v518_v43 = vsel %vm513_vm6, %v515_v26, %v517_v34  ;;  %v847_v34 = vld [vmem:[%s1848_s3 + $0x28] sm:$0xf] }
  0xf1   : > { %v410_v32 = vpop.f32.mrf.mxu1  ;;  %v508_v33 = vadd.f32 %v503_v30, %v318_v11 }
  0xf2   : > { %v504_v35 = vrot.slane %v410_v32, 1 }
  0xf3   : > { %v1343_v38 = vpop.f32.mrf.mxu1  ;;  %v521_v39 = vadd.f32 %v516_v36, %v508_v33  ;;  %v846_v36 = vld [vmem:[%s1848_s3 + $0x20] sm:$0xff] }
  0xf4   : > { %v505_v40 = vsel %vm500_vm5, %v502_v27, %v504_v35 }
  0xf5   : > { %v509_v41 = vadd.f32 %v505_v40, %v323_v10  ;;  %v528_v42 = vadd.f32 %v1252_v37, %v521_v39 }
  0xf7   : > { %v530_v44 = vmax.f32 %v528_v42, 0.0  ;;  %v522_v45 = vadd.f32 %v518_v43, %v509_v41 }
  0xf9   : > { %534 = vrot.lane.b32.xlu0 %v530_v44, %s1538_s6  ;;  %v529_v46 = vadd.f32 %v1252_v37, %v522_v45 }
  0xfb   : > { %v531_v47 = vmax.f32 %v529_v46, 0.0 }
  0xfd   : > { %536 = vrot.lane.b32.xlu0 %v531_v47, %s1538_s6  ;;  %s1478_s6 = sshll.u32 %s1541_s30, 4  ;;  %s1479_s6 = int_to_ptr.vmem [resolvable:$false] %s1478_s6 }
  0xfe   : > { %s1480_s7 = scalar_lea.vmem %s1479_s6, 512  ;;  %p1481_p0 = scmp.lt.s32.totalorder %s1801_s15, %s1479_s6 }
  0xff   : > { %p1482_p1 = scmp.lt.s32.totalorder %s1480_s7, %s1474_s22 }
 0x101   : > { %p1483_p2 = por %p1482_p1, %p1481_p0 }
 0x103   : > { %p1484_p3 = pnand %p1483_p2, %p1477_p13 }
 0x16b   : > { %v535_v48 = vpop.permute.xlu0 %534 }
 0x16c   : > { %541 = vst.msk [vmem:[#allocation2 + $0x1] sm:$0xff] %vm540_vm7, %v535_v48 }
 0x16f   : > { %v537_v49 = vpop.permute.xlu0 %536 }
 0x170   : > { %542 = vst.msk [vmem:[#allocation2 + $0x9] sm:$0xff] %vm540_vm7, %v537_v49 }
 0x173   : > { %v546_v51 = vld [vmem:[#allocation2] sm:$0xff] }
 0x174   : > { %1358 = vmatmul.mubr.msk.f32.vlgmr.msra.gmra.mxu1 %vm549_vm8, %v546_v51  ;;  %1369 = vmatmul.mubr.msk.f32.vlgmr.msra.gmra.mxu0 %vm549_vm8, %v546_v51 }
 0x175   : > { %1378 = vmatpush3.msra.mxu1 %v545_v50  ;;  %1360 = vmatprep.mubr.msk.f32.mxu1 %vm1537_vm1, %v1536_v1 }
 0x176   : > { %1371 = vmatprep.mubr.msk.f32.mxu0 %vm1537_vm1, %v1536_v1  ;;  %1401 = vmatprep.subr.mxu1 %v1536_v1 }
 0x177   : > { %v547_v52 = vld [vmem:[#allocation2 + $0x8] sm:$0xff]  ;;  %v548_v53 = vld [vmem:[#allocation2 + $0x10] sm:$0x3]  ;;  %1389 = vmatpush3.msk.msra.mxu0 %vm248_vm0, %v843_v54 }
 0x178   : > { %1361 = vmatmul.mubr.msk.f32.gmra.mxu1 %vm549_vm8, %v547_v52  ;;  %1372 = vmatmul.mubr.msk.f32.gmra.mxu0 %vm549_vm8, %v547_v52 }
 0x179   : > { %1363 = vmatprep.mubr.msk.f32.mxu1 %vm1537_vm1, %v1536_v1  ;;  %1374 = vmatprep.mubr.msk.f32.mxu0 %vm1537_vm1, %v1536_v1 }
 0x17a   : > { %1390 = vmatprep.subr.mxu0 %v1536_v1 }
 0x17b   : > { %1391 = vmatpush3.msra.mxu0 %v842_v7 }
 0x17c   : > { %1364 = vmatmul.mubr.msk.f32.gmra.mxu1 %vm549_vm8, %v548_v53  ;;  %1375 = vmatmul.mubr.msk.f32.gmra.mxu0 %vm549_vm8, %v548_v53 }
 0x17d   : > { %1379 = vmatprep.mubr.msk.f32.mxu1 %vm1537_vm1, %v1536_v1  ;;  %1392 = vmatprep.mubr.msk.f32.mxu0 %vm1537_vm1, %v1536_v1 }
 0x17e   : > { %1414 = vmatprep.subr.mxu0 %v1536_v1 }
 0x180   : > { %1380 = vmatmul.mubr.msk.f32.vlgmr.msra.gmra.mxu1 %vm549_vm8, %v546_v51 }
 0x181   : > { %1382 = vmatprep.mubr.msk.f32.mxu1 %vm1537_vm1, %v1536_v1  ;;  %1402 = vmatpush3.msk.msra.mxu1 %vm248_vm0, %v845_v14 }
 0x182   : > { %1403 = vmatprep.subr.mxu1 %v1536_v1 }
 0x183   : > { %1404 = vmatpush3.msra.mxu1 %v844_v15 }
 0x184   : > { %1383 = vmatmul.mubr.msk.f32.gmra.mxu1 %vm549_vm8, %v547_v52 }
 0x185   : > { %1385 = vmatprep.mubr.msk.f32.mxu1 %vm1537_vm1, %v1536_v1 }
 0x188   : > { %1386 = vmatmul.mubr.msk.f32.gmra.mxu1 %vm549_vm8, %v548_v53 }
 0x189   : > { %1405 = vmatprep.mubr.msk.f32.mxu1 %vm1537_vm1, %v1536_v1 }
 0x234   : > { %v625_v55 = vpop.f32.mrf.mxu1  ;;  %v704_v56 = vpop.f32.mrf.mxu0 }
 0x235   : > { %v801_v6 = vrot.slane %v704_v56, 1 }
 0x236   : > { %v1359_v57 = vpop.f32.mrf.mxu1  ;;  %v1370_v58 = vpop.f32.mrf.mxu0 }
 0x238   : > { %v630_v59 = vpop.f32.mrf.mxu1  ;;  %v709_v60 = vpop.f32.mrf.mxu0 }
 0x239   : > { %v802_v4 = vrot.slane %v709_v60, 1 }
 0x23a   : > { %v1362_v61 = vpop.f32.mrf.mxu1  ;;  %v1373_v62 = vpop.f32.mrf.mxu0 }
 0x23b   : > { %v803_v9 = vsel %vm500_vm5, %v801_v6, %v802_v4 }
 0x23c   : > { %v635_v63 = vpop.f32.mrf.mxu1  ;;  %v714_v0 = vpop.f32.mrf.mxu0  ;;  %v808_v17 = vadd.f32 %v803_v9, %v625_v55 }
 0x23d   : > { %v804_v10 = vrot.slane %v714_v0, 1  ;;  %v1275_v63 = vld [vmem:[%s1849_s4 + $0x2] ss:$0 sm:$0xff] }
 0x23e   : > { %v1365_v2 = vpop.f32.mrf.mxu1  ;;  %v1376_v3 = vpop.f32.mrf.mxu0 }
 0x23f   : > { %v805_v18 = vsel %vm500_vm5, %v802_v4, %v804_v10 }
 0x240   : > { %v784_v5 = vpop.f32.mrf.mxu1  ;;  %v809_v24 = vadd.f32 %v805_v18, %v630_v59 }
 0x241   : > { %v813_v12 = vrot.slane %v784_v5, 2 }
 0x242   : > { %v1381_v8 = vpop.f32.mrf.mxu1 }
 0x244   : > { %v789_v11 = vpop.f32.mrf.mxu1 }
 0x245   : > { %v814_v13 = vrot.slane %v789_v11, 2 }
 0x246   : > { %v1384_v16 = vpop.f32.mrf.mxu1 }
 0x247   : > { %v815_v19 = vsel %vm513_vm6, %v813_v12, %v814_v13 }
 0x248   : > { %v794_v21 = vpop.f32.mrf.mxu1  ;;  %v820_v22 = vadd.f32 %v815_v19, %v808_v17 }
 0x249   : > { %v816_v23 = vrot.slane %v794_v21, 2 }
 0x24a   : > { %v1387_v25 = vpop.f32.mrf.mxu1  ;;  %v827_v26 = vadd.f32 %v1262_v20, %v820_v22 }
 0x24b   : > { %v817_v27 = vsel %vm513_vm6, %v814_v13, %v816_v23 }
 0x24c   : > { %v829_v28 = vmax.f32 %v827_v26, 0.0  ;;  %v821_v29 = vadd.f32 %v817_v27, %v809_v24 }
 0x24e   : > { %833 = vrot.lane.b32.xlu1 %v829_v28, %s1539_s25  ;;  %v828_v30 = vadd.f32 %v1262_v20, %v821_v29 }
 0x250   : > { %v830_v31 = vmax.f32 %v828_v30, 0.0 }
 0x252   : > { %835 = vrot.lane.b32.xlu1 %v830_v31, %s1539_s25 }
 0x2c0   : > { %v834_v32 = vpop.permute.xlu1 %833 }
 0x2c1   : > { %840 = vst.msk [vmem:[#allocation2 + $0x1] sm:$0xff] %vm839_vm9, %v834_v32 }
 0x2c4   : > { %v836_v33 = vpop.permute.xlu1 %835 }
 0x2c5   : > { %841 = vst.msk [vmem:[#allocation2 + $0x9] sm:$0xff] %vm839_vm9, %v836_v33 }
 0x2c8   : > { %v848_v35 = vld [vmem:[#allocation2] sm:$0xff] }
 0x2c9   : > { %1393 = vmatmul.mubr.msk.f32.vlgmr.msra.gmra.mxu0 %vm851_vm10, %v848_v35  ;;  %1406 = vmatmul.mubr.msk.f32.vlgmr.msra.gmra.mxu1 %vm851_vm10, %v848_v35 }
 0x2ca   : > { %1415 = vmatpush3.msk.msra.mxu0 %vm248_vm0, %v847_v34  ;;  %1395 = vmatprep.mubr.msk.f32.mxu0 %vm1537_vm1, %v1536_v1 }
 0x2cb   : > { %1408 = vmatprep.mubr.msk.f32.mxu1 %vm1537_vm1, %v1536_v1  ;;  %1416 = vmatprep.subr.mxu0 %v1536_v1 }
 0x2cc   : > { %v849_v37 = vld [vmem:[#allocation2 + $0x8] sm:$0xff]  ;;  %1417 = vmatpush3.msra.mxu0 %v846_v36  ;;  %v850_v38 = vld [vmem:[#allocation2 + $0x10] sm:$0x3] }
 0x2cd   : > { %1396 = vmatmul.mubr.msk.f32.gmra.mxu0 %vm851_vm10, %v849_v37  ;;  %1409 = vmatmul.mubr.msk.f32.gmra.mxu1 %vm851_vm10, %v849_v37 }
 0x2ce   : > { %1398 = vmatprep.mubr.msk.f32.mxu0 %vm1537_vm1, %v1536_v1  ;;  %1411 = vmatprep.mubr.msk.f32.mxu1 %vm1537_vm1, %v1536_v1 }
 0x2d1   : > { %1399 = vmatmul.mubr.msk.f32.gmra.mxu0 %vm851_vm10, %v850_v38  ;;  %1412 = vmatmul.mubr.msk.f32.gmra.mxu1 %vm851_vm10, %v850_v38 }
 0x2d2   : > { %1418 = vmatprep.mubr.msk.f32.mxu0 %vm1537_vm1, %v1536_v1 }
 0x2d5   : > { %1419 = vmatmul.mubr.msk.f32.vlgmr.msra.gmra.mxu0 %vm851_vm10, %v848_v35 }
 0x2d6   : > { %1421 = vmatprep.mubr.msk.f32.mxu0 %vm1537_vm1, %v1536_v1 }
 0x2d9   : > { %1422 = vmatmul.mubr.msk.f32.gmra.mxu0 %vm851_vm10, %v849_v37 }
 0x2da   : > { %1424 = vmatprep.mubr.msk.f32.mxu0 %vm1537_vm1, %v1536_v1 }
 0x2dd   : > { %1425 = vmatmul.mubr.msk.f32.gmra.mxu0 %vm851_vm10, %v850_v38 }
 0x389   : > { %v930_v39 = vpop.f32.mrf.mxu0  ;;  %v1012_v40 = vpop.f32.mrf.mxu1 }
 0x38a   : > { %v1112_v53 = vrot.slane %v1012_v40, 1 }
 0x38b   : > { %v1394_v41 = vpop.f32.mrf.mxu0  ;;  %v1407_v42 = vpop.f32.mrf.mxu1 }
 0x38d   : > { %v935_v43 = vpop.f32.mrf.mxu0  ;;  %v1017_v44 = vpop.f32.mrf.mxu1 }
 0x38e   : > { %v1113_v51 = vrot.slane %v1017_v44, 1 }
 0x38f   : > { %v1397_v45 = vpop.f32.mrf.mxu0  ;;  %v1410_v46 = vpop.f32.mrf.mxu1 }
 0x390   : > { %v1114_v1 = vsel %vm500_vm5, %v1112_v53, %v1113_v51 }
 0x391   : > { %v940_v47 = vpop.f32.mrf.mxu0  ;;  %v1022_v48 = vpop.f32.mrf.mxu1  ;;  %v1119_v59 = vadd.f32 %v1114_v1, %v930_v39 }
 0x392   : > { %v1115_v55 = vrot.slane %v1022_v48, 1 }
 0x393   : > { %v1400_v49 = vpop.f32.mrf.mxu0  ;;  %v1413_v50 = vpop.f32.mrf.mxu1 }
 0x394   : > { %v1116_v61 = vsel %vm500_vm5, %v1113_v51, %v1115_v55 }
 0x395   : > { %v1095_v52 = vpop.f32.mrf.mxu0  ;;  %v1120_v4 = vadd.f32 %v1116_v61, %v935_v43 }
 0x396   : > { %v1124_v57 = vrot.slane %v1095_v52, 2 }
 0x397   : > { %v1420_v54 = vpop.f32.mrf.mxu0 }
 0x399   : > { %v1100_v56 = vpop.f32.mrf.mxu0 }
 0x39a   : > { %v1125_v58 = vrot.slane %v1100_v56, 2 }
 0x39b   : > { %v1423_v60 = vpop.f32.mrf.mxu0 }
 0x39c   : > { %v1126_v62 = vsel %vm513_vm6, %v1124_v57, %v1125_v58 }
 0x39d   : > { %v1131_v0 = vadd.f32 %v1126_v62, %v1119_v59  ;;  %v1105_v2 = vpop.f32.mrf.mxu0 }
 0x39e   : > { %v1127_v3 = vrot.slane %v1105_v2, 2 }
 0x39f   : > { %v1426_v5 = vpop.f32.mrf.mxu0  ;;  %v1138_v6 = vadd.f32 %v1275_v63, %v1131_v0 }
 0x3a0   : > { %v1128_v7 = vsel %vm513_vm6, %v1125_v58, %v1127_v3 }
 0x3a1   : > { %v1132_v8 = vadd.f32 %v1128_v7, %v1120_v4  ;;  %v1140_v9 = vmax.f32 %v1138_v6, 0.0 }
 0x3a3   : > { %1144 = vrot.lane.b32.xlu0 %v1140_v9, %s1540_s10  ;;  %v1139_v10 = vadd.f32 %v1275_v63, %v1132_v8 }
 0x3a5   : > { %v1141_v11 = vmax.f32 %v1139_v10, 0.0 }
 0x3a7   : > { %1146 = vrot.lane.b32.xlu1 %v1141_v11, %s1540_s10 }
 0x415   : > { %v1145_v12 = vpop.permute.xlu0 %1144 }
 0x416   : > { %1151 = vst.msk [vmem:[#allocation2 + $0x1] sm:$0xff] %vm1150_vm11, %v1145_v12 }
 0x419   : > { %v1147_v13 = vpop.permute.xlu1 %1146 }
 0x41a   : > { %1152 = vst.msk [vmem:[#allocation2 + $0x9] sm:$0xff] %vm1150_vm11, %v1147_v13 }
 0x41d   : > { %v1153_v14 = vld [vmem:[#allocation2 + $0x1] sm:$0xff] }
 0x41e   : > { %1155 = vst.msk [vmem:[%s217_s14] sm:$0xff] %vm223_vm2, %v1153_v14 }
 0x421   : > { %v1154_v15 = vld [vmem:[#allocation2 + $0x9] sm:$0xff] }
 0x422   : > { %1156 = vst.msk [vmem:[%s217_s14 + $0x8] sm:$0xff] %vm223_vm2, %v1154_v15 }
 0x423   : > { %1487 = shalt.err (!%p1484_p3)
}
 0x424   : > { %s1488_s8 = scalar_lea.hbm %s1799_s23, 256  ;;  %s1492_s11 = scalar_lea.hbm %s1850_s5, 512 }
 0x425   : > { %p1489_p4 = scmp.ne.s32.totalorder %s1799_s23, %s1488_s8  ;;  %p1493_p9 = scmp.lt.s32.totalorder %s1799_s23, %s1850_s5 }
 0x426   : > { %p1494_p10 = scmp.lt.s32.totalorder %s1492_s11, %s1488_s8 }
 0x427   : > { %p1490_p7 = pnand %p1489_p4, %p1611_p5 }
 0x428   : > { %p1495_p11 = por %p1494_p10, %p1493_p9 }
 0x429   : > { %p1491_p8 = pneg %p1490_p7 }
 0x42b   : > { %p1496_p12 = pnand %p1495_p11, %p1491_p8 }
 0x42d   : > { %1499 = shalt.err (!%p1496_p12)
}
 0x42e   : > { %s1542_s14 = smov 128  }
 0x42f   : > { %1429 = dma.vmem_to_hbm [thread:$0]  (%p1611_p5), %s1801_s15, 256, %s1799_s23, %s1804_s26, %s1542_s14, %s1542_s14, %s1539_s25  }
 0x430 PF: > { %p1435_p13 = scmp.ge.s32.totalorder %s1534_s21, 2  ;;  %s1186_s16 = sand.u32 1, %s1522_s18  }
 0x431   : > { %s1187_s17 = scalar_lea.sflag [#allocation4], %s1186_s16 }
 0x432   : > { %p1432_p0 = pnand %p1435_p13, %p1615_p6 }
 0x434   : > { %p1433_p1 = pneg %p1432_p0 }
 0x436   : > { %1517 = dma.done.wait (%p1433_p1), %s1187_s17, 256  }
 0x437   : > { %1519 = vsyncadd (%p1433_p1), %s1187_s17, 4294967040  ;;  %p15_p2 = scmp.ge.s32.totalorder %s1598_s24, 4   ;;  %s1853_s18 = smov %s1526_s19 }
 0x438   : > { %s1854_s19 = smov %s1530_s20  ;;  %s1855_s20 = smov %s1609_s27 }
 0x439   : > { %s1856_s21 = smov %s1598_s24  ;;  %17 = sbr.rel (!%p15_p2) target bundleno = 3 (0x3), region = 75 }
 0x43e   :  { %1192 = vsyncpa [#allocation4], 1 }
 0x43f   :  { %1194 = vsyncpa [#allocation4 + $0x1], 1 }

</bundles_post_ra>
